<compile_context>
chip_gen: v7x
topology: tpu7x:2x2x1
jax: 0.10.0
libtpu: 0.0.40
codegen_flags: <defaults>
</compile_context>

<pallas_src>
from functools import partial

import jax
import jax.numpy as jnp
from jax import lax
from jax.experimental import pallas as pl
from jax.experimental.pallas import tpu as pltpu


_LANES = 128
_NEG_INF = -1e30
_VMEM_BUDGET = 24 * 1024 * 1024       # conservative: fits v7x's 64 MiB with headroom
_VMEM_LIMIT = 64 * 1024 * 1024        # explicit scoped-VMEM limit for the compiler
_STEP_OVERHEAD_S = 0.35e-6            # fixed per-grid-step cost
_MXU_FLOPS = 2.5e14                   # rough sustained MXU rate (ranking only)
_HBM_BW = 1.0e12                      # rough sustained HBM bandwidth (ranking only)


def _round_down(x, m):
    return (x // m) * m


# ---------------------------------------------------------------------------
# Tile / path selection (all static Python on shapes).
# ---------------------------------------------------------------------------
def _tiled_vmem_bytes(tile, d, itemsize):
    inputs = 4 * tile * d * itemsize          # row + column blocks, double-buffered
    scratch = tile * _LANES * 4               # lane-partial row-sum accumulator
    interm = 3 * tile * tile * 4              # f32 sim / exp / mask temporaries
    return inputs + scratch + interm


def _single_block_vmem_bytes(two_n, d, itemsize):
    return two_n * d * itemsize + 3 * two_n * two_n * 4


def _tile_cost(tile, two_n, d, itemsize):
    """Rough roofline cost used only to rank candidate tile sizes."""
    padded = ((two_n + tile - 1) // tile) * tile
    blocks = padded // tile
    steps = blocks * blocks
    mxu_s = 2.0 * padded * padded * d / _MXU_FLOPS
    hbm_s = blocks * padded * d * itemsize / _HBM_BW   # column stream dominates
    return steps * _STEP_OVERHEAD_S + max(mxu_s, hbm_s)


def _pick_tile(two_n, d, itemsize, max_tile):
    # Multiples of 128 (MXU / lane-partial accumulation), capped so that
    # (a) tile <= max_tile, (b) at least 2 row blocks remain ("parallel" axis
    # can use both v7x TensorCores), (c) the VMEM footprint fits the budget.
    cap = max(_LANES, min(_round_down(max(max_tile, _LANES), _LANES),
                          _round_down(max(two_n // 2, _LANES), _LANES)))
    best_t, best_cost = _LANES, None
    t = _LANES
    while t <= cap:
        if _tiled_vmem_bytes(t, d, itemsize) <= _VMEM_BUDGET:
            cost = _tile_cost(t, two_n, d, itemsize)
            if best_cost is None or cost <= best_cost:
                best_t, best_cost = t, cost
        t += _LANES
    return best_t


# ---------------------------------------------------------------------------
# Kernels.
# ---------------------------------------------------------------------------
def _lane_partial_sum(e):
    """Sum a (rows, cols) tile over 128-wide lane groups -> (rows, 128).

    Static lane-aligned slices + VPU adds; the single cross-lane XLU reduce
    is deferred to the per-row-tile finalize.
    """
    acc = e[:, :_LANES]
    for g in range(1, e.shape[1] // _LANES):
        acc = acc + e[:, g * _LANES:(g + 1) * _LANES]
    return acc


def _sim_logits(lhs, rhs, inv_tau):
    # Contract dim 1 of BOTH operands: sim = lhs @ rhs.T on the MXU, f32 acc.
    sim = lax.dot_general(lhs, rhs,
                          dimension_numbers=(((1,), (1,)), ((), ())),
                          preferred_element_type=jnp.float32)
    return sim * inv_tau


def _simclr_single_block_kernel(c_ref, out_ref, *, inv_tau):
    """Small problems: whole (2N, D) in VMEM, scalar sum(log denom) to SMEM."""
    c = c_ref[...]
    logits = _sim_logits(c, c, inv_tau)
    r = lax.broadcasted_iota(jnp.int32, logits.shape, 0)
    col = lax.broadcasted_iota(jnp.int32, logits.shape, 1)
    e = jnp.exp(jnp.where(r == col, _NEG_INF, logits))   # diag masked before exp
    denom = jnp.sum(e, axis=1, keepdims=True)
    out_ref[0, 0] = jnp.sum(jnp.log(denom))


def _simclr_tiled_kernel(c_row_ref, c_col_ref, out_ref, row_sum_ref, *,
                         inv_tau, tile, two_n, padded):
    i = pl.program_id(0)          # row-tile axis ("parallel")
    j = pl.program_id(1)          # column-tile / reduction axis ("arbitrary")

    @pl.when(j == 0)
    def _init():
        row_sum_ref[...] = jnp.zeros_like(row_sum_ref)

    logits = _sim_logits(c_row_ref[...], c_col_ref[...], inv_tau)

    if padded > two_n:            # static: only emitted when padding exists
        # Zero-padded columns must contribute nothing; the compare is a no-op
        # for every block except the last column tile.
        col = j * tile + lax.broadcasted_iota(jnp.int32, logits.shape, 1)
        logits = jnp.where(col < two_n, logits, _NEG_INF)

    @pl.when(j == i)
    def _diag_tile():
        # Mask self-similarity BEFORE the exp so the diagonal contributes
        # exactly zero (no cancellation, no second masked reduce).
        r = lax.broadcasted_iota(jnp.int32, logits.shape, 0)
        c = lax.broadcasted_iota(jnp.int32, logits.shape, 1)
        e = jnp.exp(jnp.where(r == c, _NEG_INF, logits))
        row_sum_ref[...] += _lane_partial_sum(e)

    @pl.when(j != i)
    def _off_diag_tile():
        row_sum_ref[...] += _lane_partial_sum(jnp.exp(logits))

    @pl.when(j == pl.num_programs(1) - 1)
    def _finalize():
        denom = jnp.sum(row_sum_ref[...], axis=1, keepdims=True)  # one XLU reduce
        out_ref[...] = jnp.log(denom)


# ---------------------------------------------------------------------------
# Wrapper.
# ---------------------------------------------------------------------------
def simclr_loss(features, tau=0.1, *, max_block_rows=1024,
                single_block_rows=1024, use_bf16_matmul=False):
    """features: (2B, D). Returns the scalar SimCLR loss (float32).

    use_bf16_matmul: store the pre-normalized features in bf16 and run the
    similarity matmul on the bf16 MXU path (f32 accumulate).  Recommended on
    v6e/v7x (halves the dominant column HBM stream); default off to keep f32
    parity with the PyTorch reference.
    """
    features = jnp.asarray(features)
    two_n, d = features.shape
    assert two_n % 2 == 0, "SimCLR expects an even row count (2 views x batch)."
    n = two_n // 2
    inv_tau = 1.0 / float(tau)

    # Prologue (tiny O(2N*D) XLA ops): normalize once, positive-pair dots.
    f = features.astype(jnp.float32)
    c = f * lax.rsqrt(jnp.sum(f * f, axis=1, keepdims=True))
    pos_sum = jnp.sum(c[:n] * c[n:])                 # sum_i <c_i, c_{i+N}>

    store_dtype = jnp.bfloat16 if use_bf16_matmul else jnp.float32
    itemsize = 2 if use_bf16_matmul else 4
    c_store = c.astype(store_dtype)

    if (two_n <= single_block_rows
            and _single_block_vmem_bytes(two_n, d, itemsize) <= _VMEM_BUDGET):
        kernel = partial(_simclr_single_block_kernel, inv_tau=inv_tau)
        logden_sum = pl.pallas_call(
            kernel,
            out_shape=jax.ShapeDtypeStruct((1, 1), jnp.float32),
            in_specs=[pl.BlockSpec(memory_space=pltpu.MemorySpace.VMEM)],
            out_specs=pl.BlockSpec(memory_space=pltpu.MemorySpace.SMEM),
            compiler_params=pltpu.CompilerParams(vmem_limit_bytes=_VMEM_LIMIT),
        )(c_store)[0, 0]
    else:
        tile = _pick_tile(two_n, d, itemsize, max_block_rows)
        padded = ((two_n + tile - 1) // tile) * tile
        num_blocks = padded // tile
        if padded != two_n:
            c_store = jnp.pad(c_store, ((0, padded - two_n), (0, 0)))

        kernel = partial(_simclr_tiled_kernel, inv_tau=inv_tau, tile=tile,
                         two_n=two_n, padded=padded)
        logden = pl.pallas_call(
            kernel,
            out_shape=jax.ShapeDtypeStruct((padded, 1), jnp.float32),
            grid_spec=pltpu.PrefetchScalarGridSpec(
                num_scalar_prefetch=0,
                grid=(num_blocks, num_blocks),
                in_specs=[
                    pl.BlockSpec((tile, d), lambda i, j: (i, 0)),  # row tile
                    pl.BlockSpec((tile, d), lambda i, j: (j, 0)),  # column tile
                ],
                out_specs=pl.BlockSpec((tile, 1), lambda i, j: (i, 0)),
                scratch_shapes=[pltpu.VMEM((tile, _LANES), jnp.float32)],
            ),
            compiler_params=pltpu.CompilerParams(
                dimension_semantics=("parallel", "arbitrary"),
                vmem_limit_bytes=_VMEM_LIMIT),
        )(c_store, c_store)
        logden_sum = jnp.sum(logden[:two_n, 0])

    # loss = mean_i [ log(denom_i) - <c_i, partner_i>/tau ];  the partner-dot
    # sum over all 2N rows is 2 * pos_sum.
    return (logden_sum - 2.0 * inv_tau * pos_sum) / two_n


# ---------------------------------------------------------------------------
# Pure-JAX reference mirroring the PyTorch forward.
# ---------------------------------------------------------------------------
def _simclr_loss_ref(features, tau=0.1):
    two_n = features.shape[0]
    n = two_n // 2
    a, b = features[:n], features[n:]
    a_cap = a / jnp.linalg.norm(a, axis=1, keepdims=True)
    b_cap = b / jnp.linalg.norm(b, axis=1, keepdims=True)
    c = jnp.concatenate([a_cap, b_cap], axis=0)
    d = jnp.concatenate([b_cap, a_cap], axis=0)
    sim = c @ c.T
    e = jnp.exp(sim / tau)
    row_sum = jnp.sum(e, axis=1)
    diag = jnp.diag(e)
    numerators = jnp.exp(jnp.sum(c * d, axis=1) / tau)
    denominators = row_sum - diag
    return jnp.mean(-jnp.log(numerators / denominators))


if __name__ == "__main__":
    key = jax.random.PRNGKey(0)
    k0, k1 = jax.random.split(key)

    # Small problem (single-block path): 2B = 8 rows (B = 4 pairs), D = 32.
    feats_small = jax.random.normal(k0, (8, 32), dtype=jnp.float32)
    loss_small = jax.jit(simclr_loss)(feats_small)
    jax.block_until_ready(loss_small)
    ref_small = _simclr_loss_ref(feats_small)
    assert jnp.allclose(loss_small, ref_small, rtol=1e-4, atol=1e-5), (
        loss_small, ref_small)

    # Tiled path with a ragged (zero-padded) edge: 2N = 1200, D = 128.
    feats_big = jax.random.normal(k1, (1200, 128), dtype=jnp.float32)
    loss_big = jax.jit(simclr_loss)(feats_big)
    jax.block_until_ready(loss_big)
    ref_big = _simclr_loss_ref(feats_big)
    assert jnp.allclose(loss_big, ref_big, rtol=1e-4, atol=1e-5), (
        loss_big, ref_big)

    # bf16-stored features + bf16 MXU matmul (the v6e/v7x fast path).
    loss_bf16 = jax.jit(partial(simclr_loss, use_bf16_matmul=True))(feats_big)
    jax.block_until_ready(loss_bf16)
    assert jnp.isfinite(loss_bf16)
    assert abs(float(loss_bf16) - float(ref_big)) < 0.1 * abs(float(ref_big)) + 0.05

    print("KERNEL_OK")
</pallas_src>

<mosaic_0001>
module attributes {stable_mosaic.version = 11 : i64} {
  func.func @_simclr_single_block_kernel(%arg0: memref<8x32xf32, #tpu.memory_space<vmem>>, %arg1: memref<1x1xf32, #tpu.memory_space<smem>>) attributes {dimension_semantics = [], scalar_prefetch = 0 : i64, scratch_operands = 0 : i64, tpu.core_type = #tpu.core_type<tc>} {
    %c0 = arith.constant 0 : index
    %c0_0 = arith.constant 0 : index
    %0 = vector.load %arg0[%c0, %c0_0] : memref<8x32xf32, #tpu.memory_space<vmem>>, vector<8x32xf32>
    %cst = arith.constant dense<0.000000e+00> : vector<8x8xf32>
    %1 = tpu.matmul %0, %0, %cst {dimension_numbers = #tpu.dot_dimension_numbers<[1], [1], [0], [0], [0, 0, 1, 0], [], []>} : vector<8x32xf32>, vector<8x32xf32>, vector<8x8xf32> -> vector<8x8xf32>
    %cst_1 = arith.constant 1.000000e+01 : f32
    %2 = vector.broadcast %cst_1 : f32 to vector<8x8xf32>
    %3 = arith.mulf %1, %2 : vector<8x8xf32>
    %4 = tpu.iota {dimensions = array<i32: 0>} : vector<8x8xi32>
    %5 = tpu.iota {dimensions = array<i32: 1>} : vector<8x8xi32>
    %6 = arith.cmpi eq, %4, %5 : vector<8x8xi32>
    %cst_2 = arith.constant -1.000000e+30 : f32
    %7 = vector.broadcast %cst_2 : f32 to vector<8x8xf32>
    %8 = arith.select %6, %7, %3 : vector<8x8xi1>, vector<8x8xf32>
    %9 = math.exp %8 : vector<8x8xf32>
    %cst_3 = arith.constant dense<0.000000e+00> : vector<8xf32>
    %10 = vector.multi_reduction <add>, %9, %cst_3 [1] : vector<8x8xf32> to vector<8xf32>
    %11 = vector.shape_cast %10 : vector<8xf32> to vector<8x1xf32>
    %12 = math.log %11 : vector<8x1xf32>
    %13 = vector.shape_cast %12 : vector<8x1xf32> to vector<1x8x1xf32>
    %cst_4 = arith.constant dense<0.000000e+00> : vector<1xf32>
    %14 = vector.multi_reduction <add>, %13, %cst_4 [1, 2] : vector<1x8x1xf32> to vector<1xf32>
    %15 = vector.shape_cast %14 : vector<1xf32> to vector<1x1x1xf32>
    %16 = vector.extract %15[0, 0, 0] : f32 from vector<1x1x1xf32>
    %c0_5 = arith.constant 0 : index
    %c0_6 = arith.constant 0 : index
    %17 = memref.load %arg1[%c0_5, %c0_6] : memref<1x1xf32, #tpu.memory_space<smem>>
    memref.store %16, %arg1[%c0_5, %c0_6] : memref<1x1xf32, #tpu.memory_space<smem>>
    return
  }
}

</mosaic_0001>

<bundles_post_ra>
// kernel: simclr_loss.1
= control target key start
LH: loop header
LB: loop body
LE: loop exit
PB: predicated region body
PF: predicated region fallthrough
CT: control target
= control target key end

     0   :  { %6 = vsyncpa [#allocation3], 0  ;;  %s231_s0 = inlined_call_operand.hbm [shape: f32[8,32], index: 0, kind: input, shape index: {}]   ;;  %s232_s1 = inlined_call_operand.hbm [shape: f32[1,1], index: 1, kind: output, shape index: {}]  }
   0x1   :  { %7 = vsyncpa [#allocation4], 0  ;;  %s193_s6 = smov [#allocation2]   ;;  %s157_s10 = scalar_lea.hbm %s231_s0, 128 }
   0x2   :  { %s14_s7 = sshll.u32 %s193_s6, 4  ;;  %p158_p0 = scmp.ne.s32.totalorder %s231_s0, %s157_s10  ;;  %s15_s7 = int_to_ptr.vmem [resolvable:$true] %s14_s7 }
   0x3   :  { %p161_p1 = scmp.lt.u32.totalorder %s157_s10, %s231_s0 }
   0x5   :  { %p163_p2 = pnand %p161_p1, %p158_p0 }
   0x7   :  { %166 = shalt.err (!%p163_p2)
}
   0x8   :  { %s167_s15 = scalar_lea.vmem %s15_s7, 128  ;;  %p172_p4 = scmp.lt.s32.totalorder %s15_s7, %s15_s7 }
   0x9   :  { %p168_p3 = scmp.ne.s32.totalorder %s15_s7, %s167_s15  ;;  %p173_p5 = scmp.lt.s32.totalorder %s167_s15, %s167_s15 }
   0xb   :  { %p174_p6 = por %p173_p5, %p172_p4 }
   0xd   :  { %p175_p7 = pnand %p174_p6, %p168_p3 }
   0xf   :  { %178 = shalt.err (!%p175_p7)
}
  0x10   :  { %17 = dma.hbm_to_vmem [thread:$0]  %s231_s0, 128, %s15_s7, [#allocation3]  }
  0x11   :  { %189 = dma.done.wait [#allocation3], 128  }
  0x12   :  { %190 = vsyncadd [#allocation3], 4294967168  ;;  %v194_v0 = vmov 0.0   ;;  %vm195_vm0 = vmmov 0   ;;  %vm22_vm1 = vcmask 261120   ;;  %v21_v1 = vld [vmem:[#allocation2] sm:$0xff]  ;;  %v97_v2 = vlaneseq }
  0x13   :  { %142 = vmatprep.subr.mxu0 %v194_v0  ;;  %144 = vmatprep.mubr.msk.f32.mxu0 %vm195_vm0, %v194_v0  ;;  %vm105_vm3 = vcmask 64512   ;;  %vm111_vm4 = vcmask 7168   ;;  %s179_s20 = scalar_lea.hbm %s232_s1, 16 }
  0x14   :  { %143 = vmatpush3.xpose.msk.msra.mxu0 %vm22_vm1, %v21_v1  ;;  %v98_v3 = vshrl.u32 %v97_v2, 7  ;;  %v100_v4 = vand.u32 127, %v97_v2  ;;  %p180_p8 = scmp.ne.s32.totalorder %s232_s1, %s179_s20  ;;  %p183_p9 = scmp.lt.u32.totalorder %s179_s20, %s232_s1 }
  0x16   :  { %vm101_vm2 = vcmp.eq.s32.totalorder %v98_v3, %v100_v4  ;;  %p185_p10 = pnand %p183_p9, %p180_p8 }
  0x17   :  { %145 = vmatmul.mubr.msk.f32.vlgmr.msra.gmra.mrb[0].mxu0 %vm22_vm1, %v21_v1 }
  0xea   :  { %v92_v5 = vpop.f32.mrb[0].mxu0 }
  0xeb   :  { %v96_v6 = vmul.f32 10.0, %v92_v5  ;;  %v146_v7 = vpop.f32.mrb[1].mxu0 }
  0xed   :  { %v102_v8 = vsel %vm101_vm2, -1e+30, %v96_v6 }
  0xee   :  { %v103_v9 = vmul.f32 1.442695, %v102_v8 }
  0xf0   :  { %153 = vpow2.f32 %v103_v9 }
  0xfa   :  { %v154_v10 = vpop.eup %153 }
  0xfb   :  { %v106_v11 = vsel %vm105_vm3, %v154_v10, 0.0 }
  0xfc   :  { %107 = vadd.xlane.f32.xlu0 %v106_v11 }
 0x189   :  { %v108_v12 = vpop.xlane.xlu0 %107 }
 0x18a   :  { %155 = vlog2.f32 %v108_v12 }
 0x194   :  { %v156_v13 = vpop.eup %155 }
 0x195   :  { %v110_v14 = vmul.f32 0.6931472, %v156_v13 }
 0x197   :  { %v112_v15 = vsel %vm111_vm4, %v110_v14, 0.0 }
 0x198   :  { %113 = vadd.xlane.f32.xlu0 %v112_v15 }
 0x225   :  { %v114_v16 = vpop.xlane.xlu0 %113 }
 0x226   :  { %v115_v17 = vrot.slane %v114_v16, 4 }
 0x228   :  { %v116_v18 = vadd.f32 %v115_v17, %v114_v16 }
 0x22a   :  { %v117_v19 = vrot.slane %v116_v18, 2 }
 0x22c   :  { %v118_v20 = vadd.f32 %v117_v19, %v116_v18 }
 0x22e   :  { %v119_v21 = vrot.slane %v118_v20, 1 }
 0x230   :  { %v120_v22 = vadd.f32 %v119_v21, %v118_v20 }
 0x232   :  { %147 = vpush %v120_v22 }
 0x263   :  { %s148_s0 = spop %147 }
 0x264   :  { %123 = sst [smem:[#allocation5]] %s148_s0 }
 0x265   :  { %188 = shalt.err (!%p185_p10)
}
 0x266   :  { %s196_s25 = smov [#allocation5]  }
 0x267   :  { %131 = dma.smem_to_hbm %s196_s25, 16, %s232_s1, [#allocation4]  }
 0x268   :  { %191 = dma.done.wait [#allocation4], 16  }
 0x269   :  { %192 = vsyncadd [#allocation4], 4294967280 }
 0x26a   :  { %135 = sfence }
 0x26b   :  { %136 = vsyncpa [#allocation3], 1 }
 0x26c   :  { %137 = vsyncpa [#allocation4], 1 }

</bundles_post_ra>
